<compile_context>
chip_gen: v5e
topology: v5e:2x2
jax: 0.10.0
libtpu: 0.0.40
codegen_flags: <defaults>
</compile_context>

<pallas_src>
import functools

import jax
import jax.numpy as jnp
import numpy as np
from jax.experimental import pallas as pl
from jax.experimental.pallas import tpu as pltpu


def _sep_conv_kernel(x_ref, dww_ref, dwb_ref, pwwt_ref, pwb_ref, o_ref, *,
                     k, stride, dilation, tile_h, w_out, store_channels_last):
    """One (batch image, H-tile) step: depthwise taps + ReLU (VPU), 1x1 conv (MXU)."""
    c = x_ref.shape[-1]

    j = pl.program_id(1)
    # First padded-input row feeding this output tile; hint alignment for the dynamic slice.
    row0 = pl.multiple_of(j * tile_h * stride, tile_h * stride)

    # ---- depthwise conv: accumulate k*k shifted NHWC slices, each scaled per-channel ----
    # Depthwise bias folded into the accumulator init (saves one full-tile VPU add pass).
    acc = jnp.broadcast_to(dwb_ref[...].astype(jnp.float32), (tile_h, w_out, c))
    w_all = dww_ref[...]                                        # (k*k, C), f32 (pre-cast)
    for dy in range(k):
        for dx in range(k):
            if stride == 1:
                hs = pl.ds(row0 + dy * dilation, tile_h)
                ws = pl.ds(dx * dilation, w_out)
            else:
                # stride lands only on the leading (H) / sublane (W) axes, never on lanes (C)
                hs = pl.ds(row0 + dy * dilation, tile_h, stride)
                ws = pl.ds(dx * dilation, w_out, stride)
            patch = x_ref[0, hs, ws, :].astype(jnp.float32)     # (TH, W_out, C), f32 accum
            w_tap = w_all[dy * k + dx:dy * k + dx + 1, :]       # (1, C) -> sublane broadcast
            acc = acc + patch * w_tap
    acc = jnp.maximum(acc, 0.0)                                 # ReLU

    # ---- pointwise 1x1 conv == matmul with M = spatial rows (fills the MXU) ----
    # Note: mxu_dtype=f32 is not guaranteed full f32 precision under default dot precision.
    feat = acc.reshape(tile_h * w_out, c).astype(pwwt_ref.dtype)            # (M, C)
    out = jnp.dot(feat, pwwt_ref[...], preferred_element_type=jnp.float32)  # (M, O), f32 accum
    out = out + pwb_ref[...]                                    # (1, O) broadcast, f32

    if store_channels_last:
        # O is a multiple of 128: untransposed store is already lane-dense -> skip XLU transpose.
        o_ref[0] = out.astype(o_ref.dtype)                      # (M, O)
    else:
        # Small O: lane-dense store puts the long spatial axis on lanes.
        o_ref[0] = out.T.astype(o_ref.dtype)                    # (O, M)


def _pick_tile_h(h_out, w_out, c, o, *, budget_bytes=2 << 20, min_rows=512):
    """H-tile choice: lane-dense output stores, bounded f32 live-set, and as many grid steps as
    possible while keeping >= min_rows matmul rows per tile (keeps the MXU M dimension full)."""
    cands = [th for th in range(1, h_out + 1)
             if h_out % th == 0 and ((th * w_out) % 128 == 0 or th == h_out)]
    fits = [th for th in cands if th * w_out * (c + o) * 4 <= budget_bytes]
    if not fits:
        return min(cands)            # nothing fits the budget: smallest lane-dense divisor
    for th in sorted(fits):          # smallest tile that still reaches min_rows MXU rows
        if th * w_out >= min_rows:
            return th
    return max(fits)                 # image too small for min_rows: biggest fitting tile


def _vmem_capacity_bytes():
    """Physical VMEM of the attached TPU generation; conservative (v7x-sized) fallback."""
    try:
        info_fn = getattr(pltpu, "get_tpu_info", None)
        if info_fn is not None:
            return int(info_fn().vmem_capacity_bytes)
    except Exception:
        pass
    return 64 << 20


def separable_conv2d(x, dw_w, dw_b, pw_w, pw_b, *, stride=1, padding=0, dilation=1,
                     tile_h=None, input_dtype=jnp.bfloat16, mxu_dtype=jnp.bfloat16,
                     out_dtype=None):
    """Fused depthwise(kxk) -> ReLU -> pointwise(1x1) convolution.  NCHW in, NCHW out."""
    n, c, h, w = x.shape
    o = pw_w.shape[0]
    k = dw_w.shape[2]
    out_dtype = x.dtype if out_dtype is None else out_dtype
    h_out = (h + 2 * padding - dilation * (k - 1) - 1) // stride + 1
    w_out = (w + 2 * padding - dilation * (k - 1) - 1) // stride + 1

    # Single fused layout pass: NCHW -> NHWC (C on lanes) + narrow cast + zero halo.
    # TODO(synk): accept NHWC inputs directly to skip this extra HBM pass where possible.
    x_p = jnp.pad(jnp.transpose(x, (0, 2, 3, 1)).astype(input_dtype),
                  ((0, 0), (padding, padding), (padding, padding), (0, 0)))
    hp, wp = x_p.shape[1], x_p.shape[2]

    # Pack weights once in the wrapper (MXU operand pre-cast: no per-grid-step VPU cast).
    dww = dw_w.reshape(c, k * k).T.astype(jnp.float32)    # (k*k, C)
    dwb = dw_b.reshape(1, c).astype(jnp.float32)          # (1, C)
    pwwt = pw_w.reshape(o, c).T.astype(mxu_dtype)         # (C, O)
    pwb = pw_b.reshape(1, o).astype(jnp.float32)          # (1, O)

    th = tile_h if tile_h is not None else _pick_tile_h(h_out, w_out, c, o)
    assert h_out % th == 0, "tile_h must divide H_out"    # TODO(synk): masked-tail fallback
    assert (th * w_out) % 128 == 0 or th == h_out, "output tile must be lane-dense"
    n_ht = h_out // th

    # O on lanes is already lane-dense when O % 128 == 0 -> skip the in-kernel transpose.
    store_channels_last = (o % 128 == 0)

    kernel = functools.partial(_sep_conv_kernel, k=k, stride=stride, dilation=dilation,
                               tile_h=th, w_out=w_out,
                               store_channels_last=store_channels_last)

    # Generation-aware VMEM budget (~102 MiB on v5e/v6e's 128 MiB part, ~51 MiB on v7x's 64 MiB).
    isz = jnp.dtype(input_dtype).itemsize
    msz = jnp.dtype(mxu_dtype).itemsize
    osz = jnp.dtype(out_dtype).itemsize
    x_blk = hp * wp * c * isz
    out_blk = th * w_out * o * osz
    w_blk = (k * k * c + c + o) * 4 + c * o * msz
    live = th * w_out * (c + o) * 4                       # f32 depthwise acc + f32 matmul result
    est = 2 * (x_blk + out_blk + w_blk) + 2 * live        # double-buffered blocks + live values
    vmem_budget = int(_vmem_capacity_bytes() * 0.8)
    if est > vmem_budget:
        # TODO(synk): fall back to a slab-tiled (halo) manual-DMA input path instead of failing.
        raise NotImplementedError(
            f"padded image does not fit whole-image VMEM residency "
            f"(need ~{est >> 20} MiB, budget {vmem_budget >> 20} MiB)")
    vmem_limit = int(min(max(2 * est, 16 << 20), vmem_budget))

    # Advisory cost estimate so XLA can schedule/overlap the wrapper layout pass around the call.
    flops = 2 * n * h_out * w_out * c * (k * k + o)
    bytes_accessed = (x_p.size * isz + n * h_out * w_out * o * osz
                      + dww.size * 4 + dwb.size * 4 + pwwt.size * msz + pwb.size * 4)

    if store_channels_last:
        out_shape = jax.ShapeDtypeStruct((n, h_out * w_out, o), out_dtype)
        out_spec = pl.BlockSpec((1, th * w_out, o), lambda b, j: (b, j, 0))
    else:
        out_shape = jax.ShapeDtypeStruct((n, o, h_out * w_out), out_dtype)
        out_spec = pl.BlockSpec((1, o, th * w_out), lambda b, j: (b, 0, j))

    # Megacore (v7x): with N >= 2 split only the batch axis across cores so both TensorCores do
    # not DMA/hold the same padded image; with N == 1 the H axis is the only parallelism left.
    dim_sem = ("parallel", "arbitrary") if n >= 2 else ("arbitrary", "parallel")

    out_flat = pl.pallas_call(
        kernel,
        out_shape=out_shape,
        grid_spec=pltpu.PrefetchScalarGridSpec(
            num_scalar_prefetch=0,
            grid=(n, n_ht),
            in_specs=[
                # Whole padded image per batch index; the index map ignores the H-tile axis, so
                # each image is DMA'd once and re-used across all of its spatial tiles.
                pl.BlockSpec((1, hp, wp, c), lambda b, j: (b, 0, 0, 0)),
                pl.BlockSpec((k * k, c), lambda b, j: (0, 0)),
                pl.BlockSpec((1, c), lambda b, j: (0, 0)),
                pl.BlockSpec((c, o), lambda b, j: (0, 0)),
                pl.BlockSpec((1, o), lambda b, j: (0, 0)),
            ],
            out_specs=out_spec,
        ),
        compiler_params=pltpu.CompilerParams(
            dimension_semantics=dim_sem,
            vmem_limit_bytes=vmem_limit),
        cost_estimate=pl.CostEstimate(flops=int(flops), transcendentals=0,
                                      bytes_accessed=int(bytes_accessed)),
    )(x_p, dww, dwb, pwwt, pwb)

    if store_channels_last:
        # (N, H*W, O) -> NCHW: one wrapper transpose, cheaper than per-tile XLU transposes for
        # large O (or keep channels-last downstream and skip this entirely).
        return jnp.transpose(out_flat.reshape(n, h_out, w_out, o), (0, 3, 1, 2))
    # (N, O, H*W) -> NCHW is a free, contiguous reshape.
    return out_flat.reshape(n, o, h_out, w_out)


def _reference(x, dw_w, dw_b, pw_w, pw_b, *, stride, padding, dilation):
    """Pure-JAX reference mirroring the PyTorch forward (use_batchnorm=False)."""
    c = x.shape[1]
    dn = ("NCHW", "OIHW", "NCHW")
    y = jax.lax.conv_general_dilated(
        x, dw_w, window_strides=(stride, stride),
        padding=[(padding, padding), (padding, padding)],
        rhs_dilation=(dilation, dilation),
        dimension_numbers=dn, feature_group_count=c)
    y = jnp.maximum(y + dw_b.reshape(1, c, 1, 1), 0.0)
    z = jax.lax.conv_general_dilated(
        y, pw_w, window_strides=(1, 1), padding=[(0, 0), (0, 0)], dimension_numbers=dn)
    return z + pw_b.reshape(1, -1, 1, 1)


if __name__ == "__main__":
    # Small shapes consistent with the module: N=2, C_in=4, C_out=8, H=W=16, k=3, pad=1.
    N, C_IN, C_OUT, H, W = 2, 4, 8, 16, 16
    K, STRIDE, PAD, DIL = 3, 1, 1, 1

    key = jax.random.PRNGKey(0)
    kx, kdw, kdb, kpw, kpb, kpw2, kpb2 = jax.random.split(key, 7)

    x = jax.random.normal(kx, (N, C_IN, H, W), dtype=jnp.float32)

    # Parameter init following the module __init__ (depthwise std 0.33, pointwise std 0.06,
    # conv biases ~ U(-1/sqrt(fan_in), +1/sqrt(fan_in))).
    dw_w = 0.33 * jax.random.normal(kdw, (C_IN, 1, K, K), dtype=jnp.float32)
    pw_w = 0.06 * jax.random.normal(kpw, (C_OUT, C_IN, 1, 1), dtype=jnp.float32)
    dw_bound = 1.0 / np.sqrt(K * K)           # fan_in of depthwise = (C_in/groups)*k*k = k*k
    pw_bound = 1.0 / np.sqrt(C_IN)            # fan_in of pointwise = C_in
    dw_b = jax.random.uniform(kdb, (C_IN,), minval=-dw_bound, maxval=dw_bound, dtype=jnp.float32)
    pw_b = jax.random.uniform(kpb, (C_OUT,), minval=-pw_bound, maxval=pw_bound, dtype=jnp.float32)

    ref = _reference(x, dw_w, dw_b, pw_w, pw_b, stride=STRIDE, padding=PAD, dilation=DIL)

    # 1) f32-input / f32-MXU path, forced multi-tile spatial grid (grid (2,2), 8*16 = 128 lanes),
    #    small-O transposed store.  Tight tolerance (both sides use TPU default dot precision).
    out = separable_conv2d(x, dw_w, dw_b, pw_w, pw_b,
                           stride=STRIDE, padding=PAD, dilation=DIL, tile_h=8,
                           input_dtype=jnp.float32, mxu_dtype=jnp.float32)
    out = jax.block_until_ready(out)
    np.testing.assert_allclose(np.asarray(out), np.asarray(ref), rtol=2e-3, atol=2e-3)

    # 2) Default path: bf16 image + bf16 MXU operands (f32 accumulation), auto tile pick.
    #    Compare against the reference run on the bf16-rounded input to isolate the kernel's
    #    own error from the deliberate input-precision choice.
    ref_bf_in = _reference(x.astype(jnp.bfloat16).astype(jnp.float32),
                           dw_w, dw_b, pw_w, pw_b, stride=STRIDE, padding=PAD, dilation=DIL)
    out_bf16 = separable_conv2d(x, dw_w, dw_b, pw_w, pw_b,
                                stride=STRIDE, padding=PAD, dilation=DIL)
    out_bf16 = jax.block_until_ready(out_bf16)
    np.testing.assert_allclose(np.asarray(out_bf16), np.asarray(ref_bf_in), rtol=2e-2, atol=2e-2)

    # 3) Large-O path (O % 128 == 0): channels-last lane-dense store, no in-kernel transpose.
    C_BIG = 128
    pw_w2 = 0.06 * jax.random.normal(kpw2, (C_BIG, C_IN, 1, 1), dtype=jnp.float32)
    pw_b2 = jax.random.uniform(kpb2, (C_BIG,), minval=-pw_bound, maxval=pw_bound,
                               dtype=jnp.float32)
    ref2 = _reference(x, dw_w, dw_b, pw_w2, pw_b2, stride=STRIDE, padding=PAD, dilation=DIL)
    out2 = separable_conv2d(x, dw_w, dw_b, pw_w2, pw_b2,
                            stride=STRIDE, padding=PAD, dilation=DIL, tile_h=8,
                            input_dtype=jnp.float32, mxu_dtype=jnp.float32)
    out2 = jax.block_until_ready(out2)
    np.testing.assert_allclose(np.asarray(out2), np.asarray(ref2), rtol=2e-3, atol=2e-3)

    print("KERNEL_OK")
</pallas_src>

<mosaic_0001>
module attributes {stable_mosaic.version = 11 : i64} {
  func.func @_sep_conv_kernel(%arg0: i32, %arg1: i32, %arg2: memref<1x18x18x4xf32, #tpu.memory_space<vmem>>, %arg3: memref<9x4xf32, #tpu.memory_space<vmem>>, %arg4: memref<1x4xf32, #tpu.memory_space<vmem>>, %arg5: memref<4x8xf32, #tpu.memory_space<vmem>>, %arg6: memref<1x8xf32, #tpu.memory_space<vmem>>, %arg7: memref<1x8x128xf32, #tpu.memory_space<vmem>>) attributes {dimension_semantics = [#tpu.dimension_semantics<parallel>, #tpu.dimension_semantics<arbitrary>], iteration_bounds = array<i64: 2, 2>, scalar_prefetch = 0 : i64, scratch_operands = 0 : i64, tpu.core_type = #tpu.core_type<tc>, window_params = [{transform_indices = @transform_0, window_bounds = array<i64: 1, 18, 18, 4>}, {pipeline_mode = #tpu.pipeline_mode<synchronous>, transform_indices = @transform_1, window_bounds = array<i64: 9, 4>}, {pipeline_mode = #tpu.pipeline_mode<synchronous>, transform_indices = @transform_2, window_bounds = array<i64: 1, 4>}, {pipeline_mode = #tpu.pipeline_mode<synchronous>, transform_indices = @transform_3, window_bounds = array<i64: 4, 8>}, {pipeline_mode = #tpu.pipeline_mode<synchronous>, transform_indices = @transform_4, window_bounds = array<i64: 1, 8>}, {transform_indices = @transform_5, window_bounds = array<i64: 1, 8, 128>}]} {
    %c8_i32 = arith.constant 8 : i32
    %0 = arith.muli %arg1, %c8_i32 : i32
    %c1_i32 = arith.constant 1 : i32
    %1 = arith.muli %0, %c1_i32 : i32
    %2 = tpu.assume_multiple %1, 8 : i32
    %c0 = arith.constant 0 : index
    %c0_0 = arith.constant 0 : index
    %3 = vector.load %arg4[%c0, %c0_0] : memref<1x4xf32, #tpu.memory_space<vmem>>, vector<1x4xf32>
    %4 = vector.shape_cast %3 : vector<1x4xf32> to vector<1x1x4xf32>
    %5 = vector.broadcast %4 : vector<1x1x4xf32> to vector<8x16x4xf32>
    %c0_1 = arith.constant 0 : index
    %c0_2 = arith.constant 0 : index
    %6 = vector.load %arg3[%c0_1, %c0_2] : memref<9x4xf32, #tpu.memory_space<vmem>>, vector<9x4xf32>
    %c0_i32 = arith.constant 0 : i32
    %7 = arith.addi %2, %c0_i32 : i32
    %c0_3 = arith.constant 0 : index
    %8 = arith.index_cast %7 : i32 to index
    %c0_4 = arith.constant 0 : index
    %c0_5 = arith.constant 0 : index
    %9 = vector.load %arg2[%c0_3, %8, %c0_4, %c0_5] : memref<1x18x18x4xf32, #tpu.memory_space<vmem>>, vector<1x8x16x4xf32>
    %10 = vector.shape_cast %9 : vector<1x8x16x4xf32> to vector<8x16x4xf32>
    %11 = vector.extract_strided_slice %6 {offsets = [0, 0], sizes = [1, 4], strides = [1, 1]} : vector<9x4xf32> to vector<1x4xf32>
    %12 = vector.shape_cast %11 : vector<1x4xf32> to vector<1x1x4xf32>
    %13 = vector.broadcast %12 : vector<1x1x4xf32> to vector<8x16x4xf32>
    %14 = arith.mulf %10, %13 : vector<8x16x4xf32>
    %15 = arith.addf %5, %14 : vector<8x16x4xf32>
    %c0_i32_6 = arith.constant 0 : i32
    %16 = arith.addi %2, %c0_i32_6 : i32
    %c0_7 = arith.constant 0 : index
    %17 = arith.index_cast %16 : i32 to index
    %c1 = arith.constant 1 : index
    %c0_8 = arith.constant 0 : index
    %18 = vector.load %arg2[%c0_7, %17, %c1, %c0_8] : memref<1x18x18x4xf32, #tpu.memory_space<vmem>>, vector<1x8x16x4xf32>
    %19 = vector.shape_cast %18 : vector<1x8x16x4xf32> to vector<8x16x4xf32>
    %20 = vector.extract_strided_slice %6 {offsets = [1, 0], sizes = [1, 4], strides = [1, 1]} : vector<9x4xf32> to vector<1x4xf32>
    %21 = vector.shape_cast %20 : vector<1x4xf32> to vector<1x1x4xf32>
    %22 = vector.broadcast %21 : vector<1x1x4xf32> to vector<8x16x4xf32>
    %23 = arith.mulf %19, %22 : vector<8x16x4xf32>
    %24 = arith.addf %15, %23 : vector<8x16x4xf32>
    %c0_i32_9 = arith.constant 0 : i32
    %25 = arith.addi %2, %c0_i32_9 : i32
    %c0_10 = arith.constant 0 : index
    %26 = arith.index_cast %25 : i32 to index
    %c2 = arith.constant 2 : index
    %c0_11 = arith.constant 0 : index
    %27 = vector.load %arg2[%c0_10, %26, %c2, %c0_11] : memref<1x18x18x4xf32, #tpu.memory_space<vmem>>, vector<1x8x16x4xf32>
    %28 = vector.shape_cast %27 : vector<1x8x16x4xf32> to vector<8x16x4xf32>
    %29 = vector.extract_strided_slice %6 {offsets = [2, 0], sizes = [1, 4], strides = [1, 1]} : vector<9x4xf32> to vector<1x4xf32>
    %30 = vector.shape_cast %29 : vector<1x4xf32> to vector<1x1x4xf32>
    %31 = vector.broadcast %30 : vector<1x1x4xf32> to vector<8x16x4xf32>
    %32 = arith.mulf %28, %31 : vector<8x16x4xf32>
    %33 = arith.addf %24, %32 : vector<8x16x4xf32>
    %c1_i32_12 = arith.constant 1 : i32
    %34 = arith.addi %2, %c1_i32_12 : i32
    %c0_13 = arith.constant 0 : index
    %35 = arith.index_cast %34 : i32 to index
    %c0_14 = arith.constant 0 : index
    %c0_15 = arith.constant 0 : index
    %36 = vector.load %arg2[%c0_13, %35, %c0_14, %c0_15] : memref<1x18x18x4xf32, #tpu.memory_space<vmem>>, vector<1x8x16x4xf32>
    %37 = vector.shape_cast %36 : vector<1x8x16x4xf32> to vector<8x16x4xf32>
    %38 = vector.extract_strided_slice %6 {offsets = [3, 0], sizes = [1, 4], strides = [1, 1]} : vector<9x4xf32> to vector<1x4xf32>
    %39 = vector.shape_cast %38 : vector<1x4xf32> to vector<1x1x4xf32>
    %40 = vector.broadcast %39 : vector<1x1x4xf32> to vector<8x16x4xf32>
    %41 = arith.mulf %37, %40 : vector<8x16x4xf32>
    %42 = arith.addf %33, %41 : vector<8x16x4xf32>
    %c1_i32_16 = arith.constant 1 : i32
    %43 = arith.addi %2, %c1_i32_16 : i32
    %c0_17 = arith.constant 0 : index
    %44 = arith.index_cast %43 : i32 to index
    %c1_18 = arith.constant 1 : index
    %c0_19 = arith.constant 0 : index
    %45 = vector.load %arg2[%c0_17, %44, %c1_18, %c0_19] : memref<1x18x18x4xf32, #tpu.memory_space<vmem>>, vector<1x8x16x4xf32>
    %46 = vector.shape_cast %45 : vector<1x8x16x4xf32> to vector<8x16x4xf32>
    %47 = vector.extract_strided_slice %6 {offsets = [4, 0], sizes = [1, 4], strides = [1, 1]} : vector<9x4xf32> to vector<1x4xf32>
    %48 = vector.shape_cast %47 : vector<1x4xf32> to vector<1x1x4xf32>
    %49 = vector.broadcast %48 : vector<1x1x4xf32> to vector<8x16x4xf32>
    %50 = arith.mulf %46, %49 : vector<8x16x4xf32>
    %51 = arith.addf %42, %50 : vector<8x16x4xf32>
    %c1_i32_20 = arith.constant 1 : i32
    %52 = arith.addi %2, %c1_i32_20 : i32
    %c0_21 = arith.constant 0 : index
    %53 = arith.index_cast %52 : i32 to index
    %c2_22 = arith.constant 2 : index
    %c0_23 = arith.constant 0 : index
    %54 = vector.load %arg2[%c0_21, %53, %c2_22, %c0_23] : memref<1x18x18x4xf32, #tpu.memory_space<vmem>>, vector<1x8x16x4xf32>
    %55 = vector.shape_cast %54 : vector<1x8x16x4xf32> to vector<8x16x4xf32>
    %56 = vector.extract_strided_slice %6 {offsets = [5, 0], sizes = [1, 4], strides = [1, 1]} : vector<9x4xf32> to vector<1x4xf32>
    %57 = vector.shape_cast %56 : vector<1x4xf32> to vector<1x1x4xf32>
    %58 = vector.broadcast %57 : vector<1x1x4xf32> to vector<8x16x4xf32>
    %59 = arith.mulf %55, %58 : vector<8x16x4xf32>
    %60 = arith.addf %51, %59 : vector<8x16x4xf32>
    %c2_i32 = arith.constant 2 : i32
    %61 = arith.addi %2, %c2_i32 : i32
    %c0_24 = arith.constant 0 : index
    %62 = arith.index_cast %61 : i32 to index
    %c0_25 = arith.constant 0 : index
    %c0_26 = arith.constant 0 : index
    %63 = vector.load %arg2[%c0_24, %62, %c0_25, %c0_26] : memref<1x18x18x4xf32, #tpu.memory_space<vmem>>, vector<1x8x16x4xf32>
    %64 = vector.shape_cast %63 : vector<1x8x16x4xf32> to vector<8x16x4xf32>
    %65 = vector.extract_strided_slice %6 {offsets = [6, 0], sizes = [1, 4], strides = [1, 1]} : vector<9x4xf32> to vector<1x4xf32>
    %66 = vector.shape_cast %65 : vector<1x4xf32> to vector<1x1x4xf32>
    %67 = vector.broadcast %66 : vector<1x1x4xf32> to vector<8x16x4xf32>
    %68 = arith.mulf %64, %67 : vector<8x16x4xf32>
    %69 = arith.addf %60, %68 : vector<8x16x4xf32>
    %c2_i32_27 = arith.constant 2 : i32
    %70 = arith.addi %2, %c2_i32_27 : i32
    %c0_28 = arith.constant 0 : index
    %71 = arith.index_cast %70 : i32 to index
    %c1_29 = arith.constant 1 : index
    %c0_30 = arith.constant 0 : index
    %72 = vector.load %arg2[%c0_28, %71, %c1_29, %c0_30] : memref<1x18x18x4xf32, #tpu.memory_space<vmem>>, vector<1x8x16x4xf32>
    %73 = vector.shape_cast %72 : vector<1x8x16x4xf32> to vector<8x16x4xf32>
    %74 = vector.extract_strided_slice %6 {offsets = [7, 0], sizes = [1, 4], strides = [1, 1]} : vector<9x4xf32> to vector<1x4xf32>
    %75 = vector.shape_cast %74 : vector<1x4xf32> to vector<1x1x4xf32>
    %76 = vector.broadcast %75 : vector<1x1x4xf32> to vector<8x16x4xf32>
    %77 = arith.mulf %73, %76 : vector<8x16x4xf32>
    %78 = arith.addf %69, %77 : vector<8x16x4xf32>
    %c2_i32_31 = arith.constant 2 : i32
    %79 = arith.addi %2, %c2_i32_31 : i32
    %c0_32 = arith.constant 0 : index
    %80 = arith.index_cast %79 : i32 to index
    %c2_33 = arith.constant 2 : index
    %c0_34 = arith.constant 0 : index
    %81 = vector.load %arg2[%c0_32, %80, %c2_33, %c0_34] : memref<1x18x18x4xf32, #tpu.memory_space<vmem>>, vector<1x8x16x4xf32>
    %82 = vector.shape_cast %81 : vector<1x8x16x4xf32> to vector<8x16x4xf32>
    %83 = vector.extract_strided_slice %6 {offsets = [8, 0], sizes = [1, 4], strides = [1, 1]} : vector<9x4xf32> to vector<1x4xf32>
    %84 = vector.shape_cast %83 : vector<1x4xf32> to vector<1x1x4xf32>
    %85 = vector.broadcast %84 : vector<1x1x4xf32> to vector<8x16x4xf32>
    %86 = arith.mulf %82, %85 : vector<8x16x4xf32>
    %87 = arith.addf %78, %86 : vector<8x16x4xf32>
    %cst = arith.constant 0.000000e+00 : f32
    %88 = vector.broadcast %cst : f32 to vector<8x16x4xf32>
    %89 = arith.maximumf %87, %88 : vector<8x16x4xf32>
    %90 = vector.shape_cast %89 : vector<8x16x4xf32> to vector<128x4xf32>
    %c0_35 = arith.constant 0 : index
    %c0_36 = arith.constant 0 : index
    %91 = vector.load %arg5[%c0_35, %c0_36] : memref<4x8xf32, #tpu.memory_space<vmem>>, vector<4x8xf32>
    %cst_37 = arith.constant dense<0.000000e+00> : vector<128x8xf32>
    %92 = tpu.matmul %90, %91, %cst_37 {dimension_numbers = #tpu.dot_dimension_numbers<[1], [0], [0], [1], [0, 0, 1, 1], [], []>} : vector<128x4xf32>, vector<4x8xf32>, vector<128x8xf32> -> vector<128x8xf32>
    %c0_38 = arith.constant 0 : index
    %c0_39 = arith.constant 0 : index
    %93 = vector.load %arg6[%c0_38, %c0_39] : memref<1x8xf32, #tpu.memory_space<vmem>>, vector<1x8xf32>
    %94 = vector.broadcast %93 : vector<1x8xf32> to vector<128x8xf32>
    %95 = arith.addf %92, %94 : vector<128x8xf32>
    %96 = tpu.transpose %95, [1, 0] : vector<128x8xf32> -> vector<8x128xf32>
    %c0_40 = arith.constant 0 : index
    %c0_41 = arith.constant 0 : index
    %c0_42 = arith.constant 0 : index
    %97 = vector.load %arg7[%c0_40, %c0_41, %c0_42] : memref<1x8x128xf32, #tpu.memory_space<vmem>>, vector<1x8x128xf32>
    %98 = vector.shape_cast %97 : vector<1x8x128xf32> to vector<8x128xf32>
    %99 = vector.shape_cast %96 : vector<8x128xf32> to vector<1x8x128xf32>
    tpu.vector_store %arg7[%c0_40, %c0_41, %c0_42], %99 {strides = array<i32>} : memref<1x8x128xf32, #tpu.memory_space<vmem>>, vector<1x8x128xf32>,
    return
  }
  func.func @transform_0(%arg0: i32, %arg1: i32) -> (i32, i32, i32, i32) {
    %c0_i32 = arith.constant 0 : i32
    %c0_i32_0 = arith.constant 0 : i32
    %c0_i32_1 = arith.constant 0 : i32
    %c0_i32_2 = arith.constant 0 : i32
    return %arg0, %c0_i32, %c0_i32_0, %c0_i32_1 : i32, i32, i32, i32
  }
  func.func @transform_1(%arg0: i32, %arg1: i32) -> (i32, i32) {
    %c0_i32 = arith.constant 0 : i32
    %c0_i32_0 = arith.constant 0 : i32
    %c0_i32_1 = arith.constant 0 : i32
    return %c0_i32, %c0_i32_0 : i32, i32
  }
  func.func @transform_2(%arg0: i32, %arg1: i32) -> (i32, i32) {
    %c0_i32 = arith.constant 0 : i32
    %c0_i32_0 = arith.constant 0 : i32
    %c0_i32_1 = arith.constant 0 : i32
    return %c0_i32, %c0_i32_0 : i32, i32
  }
  func.func @transform_3(%arg0: i32, %arg1: i32) -> (i32, i32) {
    %c0_i32 = arith.constant 0 : i32
    %c0_i32_0 = arith.constant 0 : i32
    %c0_i32_1 = arith.constant 0 : i32
    return %c0_i32, %c0_i32_0 : i32, i32
  }
  func.func @transform_4(%arg0: i32, %arg1: i32) -> (i32, i32) {
    %c0_i32 = arith.constant 0 : i32
    %c0_i32_0 = arith.constant 0 : i32
    %c0_i32_1 = arith.constant 0 : i32
    return %c0_i32, %c0_i32_0 : i32, i32
  }
  func.func @transform_5(%arg0: i32, %arg1: i32) -> (i32, i32, i32) {
    %c0_i32 = arith.constant 0 : i32
    %c0_i32_0 = arith.constant 0 : i32
    return %arg0, %c0_i32, %arg1 : i32, i32, i32
  }
}

</mosaic_0001>

<bundles_post_ra>
// kernel: tpu_custom_call.1
= control target key start
LH: loop header
LB: loop body
LE: loop exit
PB: predicated region body
PF: predicated region fallthrough
CT: control target
= control target key end

     0   :  { %s1835_s0 = inlined_call_operand.vmem [shape: f32[2,18,18,4], index: 0, kind: input, shape index: {}]   ;;  %s1836_s1 = inlined_call_operand.vmem [shape: f32[9,4], index: 1, kind: input, shape index: {}]   ;;  %s1837_s2 = inlined_call_operand.vmem [shape: f32[1,4], index: 2, kind: input, shape index: {}]   ;;  %s1838_s3 = inlined_call_operand.vmem [shape: f32[4,8], index: 3, kind: input, shape index: {}]   ;;  %s1839_s4 = inlined_call_operand.vmem [shape: f32[1,8], index: 4, kind: input, shape index: {}]   ;;  %s1840_s5 = inlined_call_operand.hbm [shape: f32[2,8,256], index: 5, kind: output, shape index: {}]  }
   0x1   :  { %1841 = sst [smem:[#allocation5_spill]] %s1835_s0 }
   0x2   :  { %10 = vsyncpa [#allocation3], 0 }
   0x3   :  { %12 = vsyncpa [#allocation3 + $0x1], 0  ;;  %s1300_s18 = smov 0   ;;  %s1302_s19 = smov 0  }
   0x4   :  { %s1304_s20 = smov 0   ;;  %s1306_s21 = smov 0  }
   0x5   :  { %s1308_s22 = smov 0   ;;  %s1310_s23 = smov 0  }
   0x6   :  { %s1312_s24 = smov 0   ;;  %s1314_s25 = smov 0  }
   0x7 LB: > { %s965_s26 = sadd.s32 4294967295, %s1268_s25   ;;  %s966_s27 = sadd.s32 4294967294, %s1268_s25   ;;  %s1268_s25 = sphi %s1314_s25, %s18_s25   ;;  %s1264_s24 = sphi %s1312_s24, %s1851_s24   ;;  %s1260_s23 = sphi %s1310_s23, %s1850_s23   ;;  %s1256_s22 = sphi %s1308_s22, %s1849_s22   ;;  %s1252_s21 = sphi %s1306_s21, %s1848_s21   ;;  %s1248_s20 = sphi %s1304_s20, %s1847_s20   ;;  %s1244_s19 = sphi %s1302_s19, %s1846_s19   ;;  %s1240_s18 = sphi %s1300_s18, %s1845_s18  }
   0x8   : > { %s27_s28 = sadd.s32 1, %s1260_s23  ;;  %s30_s29 = sadd.s32 1, %s1264_s24 }
   0x9   : > { %p28_p0 = scmp.ge.s32.totalorder %s27_s28, 2  ;;  %p159_p1 = scmp.ne.s32.totalorder %s1248_s20, %s1244_s19 }
   0xa   : > { %p160_p2 = scmp.eq.s32.totalorder %s965_s26, 3  ;;  %p165_p5 = scmp.ne.s32.totalorder %s1244_s19, %s1240_s18 }
   0xb   : > { %s1853_s28 = smov (%p28_p0, %s27_s28), 0  ;;  %s1855_s29 = smov (!%p28_p0, %s30_s29), %s1264_s24 }
   0xc   : > { %s145_s30 = ssub.s32 %s1260_s23, %s1853_s28  ;;  %p1351_p3 = por %p160_p2, %p159_p1 }
   0xd   : > { %p32_p4 = scmp.ge.s32.totalorder %s1855_s29, 2  ;;  %p166_p6 = scmp.eq.s32.totalorder %s966_s27, 3 }
   0xe   : > { %p969_p7 = scmp.ge.s32.totalorder %s1268_s25, 1  ;;  %p204_p9 = scmp.lt.s32.totalorder %s1268_s25, 5 }
   0xf   : > { %s1857_s29 = smov (%p32_p4, %s1855_s29), 0  ;;  %p1360_p8 = por %p166_p6, %p165_p5 }
  0x10   : > { %s144_s8 = ssub.s32 %s1264_s24, %s1857_s29  ;;  %s149_s9 = sadd.s32 1, %s1248_s20 }
  0x11   : > { %s146_s10 = sor.u32 %s145_s30, %s144_s8  ;;  %p205_p10 = pnand %p969_p7, %p204_p9 }
  0x12   : > { %p147_p11 = scmp.eq.s32.totalorder %s146_s10, 0  ;;  %p232_p12 = scmp.lt.s32.totalorder (!%p205_p10), %s1256_s22, 1 }
  0x13   : > { %208 = sbr.rel (%p205_p10) target bundleno = 349 (0x15d), region = 40  ;;  %s1844_s0 = sld [smem:[#allocation5_spill]] (!%p205_p10) }
  0x14   : > { %s1369_s11 = scalar_select %p147_p11, %s1248_s20, %s149_s9  }
  0x15   : > { %s973_s17 = smul.u32 (!%p205_p10), 192, %s1252_s21 }
  0x18   : > { %v709_v0 = vld [vmem:[%s1838_s3] sm:$0xf]  ;;  %vm763_vm0 = vcmask 1043456   ;;  %s233_s14 = scalar_select %p232_p12, %s1256_s22, 1  ;;  %v1406_v11 = vld [vmem:[%s1836_s1 + $0x8] ss:$0 sm:$0xff] }
  0x19   : > { %1074 = vmatpush.msk.msra.mxu0 %vm763_vm0, %v709_v0  ;;  %1096 = vmatpush.msk.msra.mxu1 %vm763_vm0, %v709_v0  ;;  %v242_v1 = vld [vmem:[%s1836_s1] sm:$0xff]  ;;  %vm714_vm1 = vcmask 31744  }
  0x1a   : > { %1097 = vmatpush.msk.msra.mxu2 %vm763_vm0, %v709_v0  ;;  %1098 = vmatpush.msk.msra.mxu3 %vm763_vm0, %v709_v0  ;;  %s1099_s26 = smul.u32 432, %s233_s14  ;;  %v1380_v2 = vperm.slane %v242_v1, 0  ;;  %v1382_v3 = vperm.slane %v242_v1, 1  ;;  %v1390_v4 = vld [vmem:[%s1837_s2] ss:$0 sm:$0xff]  ;;  %v1394_v5 = vperm.slane %v242_v1, 2 }
  0x1b   : > { %v1399_v9 = vperm.slane %v242_v1, 3  ;;  %v1401_v10 = vperm.slane %v242_v1, 4  ;;  %v1413_v17 = vperm.slane %v242_v1, 5  ;;  %v1415_v18 = vperm.slane %v242_v1, 6 }
  0x1c   : > { %s236_s8 = scalar_lea.vmem %s1844_s0, %s1099_s26  ;;  %v1423_v21 = vperm.slane %v242_v1, 7  ;;  %s229_s26 = sand.u32 1, %s1244_s19  }
  0x1d   : > { %s1392_s12 = scalar_lea.vmem %s236_s8, %s973_s17  ;;  %s1092_s17 = sshll.u32 %s1256_s22, 1 }
  0x1e   : > { %v246_v6 = vld [vmem:[%s1392_s12] sm:$0xff]  ;;  %v976_v14 = vld [vmem:[%s1392_s12 + $0x18] sm:$0xff]  ;;  %v1418_v19 = vld [vmem:[%s1392_s12 + $0x30] sm:$0xff]  ;;  %s876_s27 = sadd.s32 %s1252_s21, %s1092_s17  ;;  %s970_s30 = sshll.u32 %s229_s26, 3 }
  0x1f   : > { %v295_v7 = vld [vmem:[%s1392_s12 + $0x1] sm:$0xff]  ;;  %v263_v12 = vmul.f32 %v1380_v2, %v246_v6  ;;  %v992_v15 = vld [vmem:[%s1392_s12 + $0x19] sm:$0xff]  ;;  %v1421_v20 = vld [vmem:[%s1392_s12 + $0x31] sm:$0xff]  ;;  %v265_v23 = vmul.f32 %v976_v14, %v1380_v2  ;;  %v413_v29 = vmul.f32 %v976_v14, %v1399_v9  ;;  %v563_v36 = vmul.f32 %v1418_v19, %v1415_v18  ;;  %s1093_s8 = sshll.u32 %s876_s27, 3  ;;  %s231_s13 = scalar_lea.vmem [#allocation2], %s970_s30 }
  0x20   : > { %v344_v8 = vld [vmem:[%s1392_s12 + $0x2] sm:$0xff]  ;;  %v312_v13 = vmul.f32 %v1382_v3, %v295_v7  ;;  %v1008_v16 = vld [vmem:[%s1392_s12 + $0x1a] sm:$0xff]  ;;  %v1426_v22 = vld [vmem:[%s1392_s12 + $0x32] sm:$0xff]  ;;  %v462_v30 = vmul.f32 %v992_v15, %v1401_v10  ;;  %v612_v41 = vmul.f32 %v1421_v20, %v1423_v21  ;;  %v314_v49 = vmul.f32 %v992_v15, %v1382_v3  ;;  %s880_s14 = sshll.u32 %s231_s13, 4  ;;  %s866_s16 = scalar_lea.sflag [#allocation3], %s229_s26  ;;  %s881_s14 = int_to_ptr.vmem [resolvable:$true] %s880_s14 }
  0x21   : > { %v279_v24 = vadd.f32 %v1390_v4, %v263_v12  ;;  %v361_v25 = vmul.f32 %v1394_v5, %v344_v8  ;;  %v247_v26 = vld [vmem:[%s1392_s12 + $0x8] sm:$0xff]  ;;  %v977_v33 = vld [vmem:[%s1392_s12 + $0x20] sm:$0xff]  ;;  %v511_v35 = vmul.f32 %v1008_v16, %v1413_v17  ;;  %v1445_v39 = vld [vmem:[%s1392_s12 + $0x38] sm:$0xff]  ;;  %v281_v40 = vadd.f32 %v1390_v4, %v265_v23  ;;  %s1194_s27 = scalar_lea.hbm %s1840_s5, 32 }
  0x22   : > { %v296_v27 = vld [vmem:[%s1392_s12 + $0x9] sm:$0xff]  ;;  %v264_v31 = vmul.f32 %v1380_v2, %v247_v26  ;;  %v993_v37 = vld [vmem:[%s1392_s12 + $0x21] sm:$0xff]  ;;  %v661_v42 = vmul.f32 %v1406_v11, %v1426_v22  ;;  %v1455_v45 = vld [vmem:[%s1392_s12 + $0x39] sm:$0xff]  ;;  %v414_v47 = vmul.f32 %v977_v33, %v1399_v9  ;;  %v363_v50 = vmul.f32 %v1008_v16, %v1394_v5 }
  0x23   : > { %v345_v28 = vld [vmem:[%s1392_s12 + $0xa] sm:$0xff]  ;;  %v313_v32 = vmul.f32 %v1382_v3, %v296_v27  ;;  %v328_v34 = vadd.f32 %v312_v13, %v279_v24  ;;  %v1009_v38 = vld [vmem:[%s1392_s12 + $0x22] sm:$0xff]  ;;  %v1459_v48 = vld [vmem:[%s1392_s12 + $0x3a] sm:$0xff]  ;;  %v463_v52 = vmul.f32 %v993_v37, %v1401_v10  ;;  %v564_v54 = vmul.f32 %v1445_v39, %v1415_v18 }
  0x24   : > { %v280_v43 = vadd.f32 %v1390_v4, %v264_v31  ;;  %v362_v44 = vmul.f32 %v1394_v5, %v345_v28  ;;  %v512_v53 = vmul.f32 %v1009_v38, %v1413_v17  ;;  %v613_v56 = vmul.f32 %v1455_v45, %v1423_v21  ;;  %v1472_v59 = vld [vmem:[%s1392_s12 + $0x48] sm:$0xff] }
  0x25   : > { %v377_v46 = vadd.f32 %v361_v25, %v328_v34  ;;  %v330_v57 = vadd.f32 %v314_v49, %v281_v40  ;;  %v415_v58 = vmul.f32 %v1418_v19, %v1399_v9  ;;  %v662_v61 = vmul.f32 %v1406_v11, %v1459_v48  ;;  %v1477_v62 = vld [vmem:[%s1392_s12 + $0x49] sm:$0xff] }
  0x26   : > { %v329_v51 = vadd.f32 %v313_v32, %v280_v43  ;;  %v266_v63 = vmul.f32 %v977_v33, %v1380_v2  ;;  %v315_v0 = vmul.f32 %v993_v37, %v1382_v3  ;;  %v464_v7 = vmul.f32 %v1421_v20, %v1401_v10  ;;  %v1488_v14 = vld [vmem:[%s1392_s12 + $0x4a] sm:$0xff] }
  0x27   : > { %v429_v55 = vadd.f32 %v413_v29, %v377_v46  ;;  %v379_v6 = vadd.f32 %v363_v50, %v330_v57  ;;  %v513_v8 = vmul.f32 %v1426_v22, %v1413_v17  ;;  %v565_v13 = vmul.f32 %v1472_v59, %v1415_v18  ;;  %v1497_v29 = vld [vmem:[%s1392_s12 + $0x50] sm:$0xff] }
  0x28   : > { %v378_v60 = vadd.f32 %v362_v44, %v329_v51  ;;  %v282_v15 = vadd.f32 %v1390_v4, %v266_v63  ;;  %v364_v16 = vmul.f32 %v1009_v38, %v1394_v5  ;;  %v614_v25 = vmul.f32 %v1477_v62, %v1423_v21  ;;  %v1045_v57 = vld [vmem:[%s1392_s12 + $0x51] sm:$0xff] }
  0x29   : > { %v478_v1 = vadd.f32 %v462_v30, %v429_v55  ;;  %v431_v24 = vadd.f32 %v415_v58, %v379_v6  ;;  %v416_v26 = vmul.f32 %v1445_v39, %v1399_v9  ;;  %v267_v30 = vmul.f32 %v1418_v19, %v1380_v2 }
  0x2a   : > { %v430_v12 = vadd.f32 %v414_v47, %v378_v60  ;;  %v331_v28 = vadd.f32 %v315_v0, %v282_v15  ;;  %v316_v31 = vmul.f32 %v1421_v20, %v1382_v3  ;;  %v663_v34 = vmul.f32 %v1406_v11, %v1488_v14  ;;  %v1061_v0 = vld [vmem:[%s1392_s12 + $0x52] sm:$0xff] }
  0x2b   : > { %v527_v23 = vadd.f32 %v511_v35, %v478_v1  ;;  %v480_v33 = vadd.f32 %v464_v7, %v431_v24  ;;  %v465_v35 = vmul.f32 %v1455_v45, %v1401_v10  ;;  %v283_v40 = vadd.f32 %v1390_v4, %v267_v30  ;;  %v1551_v30 = vld [vmem:[%s1392_s12 + $0x68] sm:$0xff] }
  0x2c   : > { %v479_v27 = vadd.f32 %v463_v52, %v430_v12  ;;  %v380_v38 = vadd.f32 %v364_v16, %v331_v28  ;;  %v365_v43 = vmul.f32 %v1426_v22, %v1394_v5  ;;  %v514_v20 = vmul.f32 %v1459_v48, %v1413_v17 }
  0x2d   : > { %v579_v32 = vadd.f32 %v563_v36, %v527_v23  ;;  %v529_v44 = vadd.f32 %v513_v8, %v480_v33  ;;  %v566_v36 = vmul.f32 %v1497_v29, %v1415_v18  ;;  %v332_v49 = vadd.f32 %v316_v31, %v283_v40  ;;  %v1533_v8 = vld [vmem:[%s1392_s12 + $0x61] sm:$0xff]  ;;  %v1556_v33 = vld [vmem:[%s1392_s12 + $0x69] sm:$0xff] }
  0x2e   : > { %v528_v37 = vadd.f32 %v512_v53, %v479_v27  ;;  %v432_v47 = vadd.f32 %v416_v26, %v380_v38  ;;  %v417_v50 = vmul.f32 %v1472_v59, %v1399_v9  ;;  %v466_v22 = vmul.f32 %v1477_v62, %v1401_v10 }
  0x2f   : > { %v628_v19 = vadd.f32 %v612_v41, %v579_v32  ;;  %v581_v52 = vadd.f32 %v565_v13, %v529_v44  ;;  %v268_v41 = vmul.f32 %v1445_v39, %v1380_v2  ;;  %v317_v58 = vmul.f32 %v1455_v45, %v1382_v3  ;;  %v1538_v13 = vld [vmem:[%s1392_s12 + $0x62] sm:$0xff] }
  0x30   : > { %v580_v46 = vadd.f32 %v564_v54, %v528_v37  ;;  %v481_v55 = vadd.f32 %v465_v35, %v432_v47  ;;  %v381_v54 = vadd.f32 %v365_v43, %v332_v49  ;;  %v366_v6 = vmul.f32 %v1459_v48, %v1394_v5  ;;  %v1559_v35 = vld [vmem:[%s1392_s12 + $0x6a] sm:$0xff] }
  0x31   : > { %v677_v51 = vadd.f32 %v661_v42, %v628_v19  ;;  %v630_v63 = vadd.f32 %v614_v25, %v581_v52  ;;  %v1525_v42 = vld [vmem:[%s1392_s12 + $0x60] sm:$0xff]  ;;  %v284_v1 = vadd.f32 %v1390_v4, %v268_v41  ;;  %v615_v12 = vmul.f32 %v1045_v57, %v1423_v21 }
  0x32   : > { %v629_v53 = vadd.f32 %v613_v56, %v580_v46  ;;  %v530_v7 = vadd.f32 %v514_v20, %v481_v55  ;;  %v433_v39 = vadd.f32 %v417_v50, %v381_v54  ;;  %v515_v56 = vmul.f32 %v1488_v14, %v1413_v17  ;;  %v1582_v41 = vld [vmem:[%s1392_s12 + $0x79] sm:$0xff] }
  0x33   : > { %v693_v60 = vmax.f32 %v677_v51, 0.0  ;;  %v333_v15 = vadd.f32 %v317_v58, %v284_v1  ;;  %v418_v48 = vmul.f32 %v1497_v29, %v1399_v9  ;;  %v664_v23 = vmul.f32 %v1406_v11, %v1061_v0  ;;  %v1593_v1 = vld [vmem:[%s1392_s12 + $0x7a] sm:$0xff] }
  0x34   : > { %v678_v45 = vadd.f32 %v662_v61, %v629_v53  ;;  %v582_v16 = vadd.f32 %v566_v36, %v530_v7  ;;  %v482_v24 = vadd.f32 %v466_v22, %v433_v39  ;;  %v567_v25 = vmul.f32 %v1525_v42, %v1415_v18  ;;  %v1579_v22 = vld [vmem:[%s1392_s12 + $0x78] sm:$0xff] }
  0x35   : > { %1075 = vmatmul.msk.f32.vlgmr.msra.gmra.mxu0 %vm714_vm1, %v693_v60  ;;  %v1545_v26 = vadd.f32 %v663_v34, %v630_v63  ;;  %v616_v61 = vmul.f32 %v1533_v8, %v1423_v21  ;;  %v382_v27 = vadd.f32 %v366_v6, %v333_v15  ;;  %v467_v28 = vmul.f32 %v1045_v57, %v1401_v10 }
  0x36   : > { %v531_v31 = vadd.f32 %v515_v56, %v482_v24  ;;  %v665_v32 = vmul.f32 %v1406_v11, %v1538_v13  ;;  %v269_v34 = vmul.f32 %v1472_v59, %v1380_v2  ;;  %v318_v37 = vmul.f32 %v1477_v62, %v1382_v3  ;;  %v1611_v24 = vld [vmem:[%s1392_s12 + $0x81] sm:$0xff] }
  0x37   : > { %v694_v38 = vmax.f32 %v678_v45, 0.0  ;;  %v631_v40 = vadd.f32 %v615_v12, %v582_v16  ;;  %v434_v43 = vadd.f32 %v418_v48, %v382_v27  ;;  %v516_v19 = vmul.f32 %v1061_v0, %v1413_v17 }
  0x38   : > { %v583_v44 = vadd.f32 %v567_v25, %v531_v31  ;;  %v568_v20 = vmul.f32 %v1551_v30, %v1415_v18  ;;  %v285_v36 = vadd.f32 %v1390_v4, %v269_v34  ;;  %v367_v46 = vmul.f32 %v1488_v14, %v1394_v5 }
  0x39   : > { %v695_v59 = vmax.f32 %v1545_v26, 0.0  ;;  %v483_v47 = vadd.f32 %v467_v28, %v434_v43  ;;  %v617_v62 = vmul.f32 %v1556_v33, %v1423_v21  ;;  %v666_v49 = vmul.f32 %v1406_v11, %v1559_v35 }
  0x3a   : > { %v632_v50 = vadd.f32 %v616_v61, %v583_v44  ;;  %v334_v51 = vadd.f32 %v318_v37, %v285_v36  ;;  %v419_v52 = vmul.f32 %v1525_v42, %v1399_v9  ;;  %v270_v14 = vmul.f32 %v1497_v29, %v1380_v2  ;;  %v1624_v37 = vld [vmem:[%s1392_s12 + $0x82] sm:$0xff]  ;;  %v1637_v36 = vld [vmem:[%s1392_s12 + $0x90] sm:$0xff] }
  0x3b   : > { %v1587_v53 = vadd.f32 %v664_v23, %v631_v40  ;;  %v532_v55 = vadd.f32 %v516_v19, %v483_v47  ;;  %v468_v54 = vmul.f32 %v1533_v8, %v1401_v10  ;;  %v319_v58 = vmul.f32 %v1045_v57, %v1382_v3  ;;  %v1608_v23 = vld [vmem:[%s1392_s12 + $0x80] sm:$0xff] }
  0x3c   : > { %v681_v60 = vadd.f32 %v665_v32, %v632_v50  ;;  %v383_v63 = vadd.f32 %v367_v46, %v334_v51  ;;  %v286_v6 = vadd.f32 %v1390_v4, %v270_v14  ;;  %v368_v29 = vmul.f32 %v1061_v0, %v1394_v5 }
  0x3d   : > { %1076 = vmatmul.msk.f32.gmra.mxu0 %vm714_vm1, %v694_v38  ;;  %v584_v7 = vadd.f32 %v568_v20, %v532_v55  ;;  %v517_v39 = vmul.f32 %v1538_v13, %v1413_v17  ;;  %v569_v56 = vmul.f32 %v1579_v22, %v1415_v18  ;;  %v618_v57 = vmul.f32 %v1582_v41, %v1423_v21 }
  0x3e   : > { %v697_v45 = vmax.f32 %v681_v60, 0.0  ;;  %v435_v12 = vadd.f32 %v419_v52, %v383_v63  ;;  %v335_v15 = vadd.f32 %v319_v58, %v286_v6  ;;  %v420_v48 = vmul.f32 %v1551_v30, %v1399_v9  ;;  %v1050_v58 = vld [vmem:[%s1392_s12 + $0x91] sm:$0xff] }
  0x3f   : > { %v633_v16 = vadd.f32 %v617_v62, %v584_v7  ;;  %v667_v0 = vmul.f32 %v1406_v11, %v1593_v1  ;;  %v271_v25 = vmul.f32 %v1525_v42, %v1380_v2  ;;  %v320_v26 = vmul.f32 %v1533_v8, %v1382_v3  ;;  %v1656_v60 = vld [vmem:[%s1392_s12 + $0x92] sm:$0xff] }
  0x40   : > { %v696_v61 = vmax.f32 %v1587_v53, 0.0  ;;  %1079 = vmatmul.msk.f32.vlgmr.msra.gmra.mxu1 %vm714_vm1, %v697_v45  ;;  %v484_v27 = vadd.f32 %v468_v54, %v435_v12  ;;  %v384_v28 = vadd.f32 %v368_v29, %v335_v15  ;;  %v469_v31 = vmul.f32 %v1556_v33, %v1401_v10  ;;  %v1668_v12 = vld [vmem:[%s1392_s12 + $0x98] sm:$0xff] }
  0x41   : > { %v682_v32 = vadd.f32 %v666_v49, %v633_v16  ;;  %v518_v34 = vmul.f32 %v1559_v35, %v1413_v17  ;;  %v287_v42 = vadd.f32 %v1390_v4, %v271_v25  ;;  %v369_v8 = vmul.f32 %v1538_v13, %v1394_v5 }
  0x42   : > { %v533_v38 = vadd.f32 %v517_v39, %v484_v27  ;;  %v436_v40 = vadd.f32 %v420_v48, %v384_v28  ;;  %v570_v43 = vmul.f32 %v1608_v23, %v1415_v18  ;;  %v619_v19 = vmul.f32 %v1611_v24, %v1423_v21 }
  0x43   : > { %v336_v44 = vadd.f32 %v320_v26, %v287_v42  ;;  %v421_v20 = vmul.f32 %v1579_v22, %v1399_v9  ;;  %v272_v13 = vmul.f32 %v1551_v30, %v1380_v2  ;;  %v321_v46 = vmul.f32 %v1556_v33, %v1382_v3 }
  0x44   : > { %v698_v47 = vmax.f32 %v682_v32, 0.0  ;;  %v585_v62 = vadd.f32 %v569_v56, %v533_v38  ;;  %v485_v49 = vadd.f32 %v469_v31, %v436_v40  ;;  %v470_v51 = vmul.f32 %v1582_v41, %v1401_v10  ;;  %v1067_v40 = vld [vmem:[%s1392_s12 + $0x9a] sm:$0xff] }
  0x45   : > { %1077 = vmatmul.msk.f32.gmra.mxu0 %vm714_vm1, %v695_v59  ;;  %v668_v59 = vmul.f32 %v1406_v11, %v1624_v37  ;;  %v385_v50 = vadd.f32 %v369_v8, %v336_v44  ;;  %v288_v52 = vadd.f32 %v1390_v4, %v272_v13  ;;  %v370_v14 = vmul.f32 %v1559_v35, %v1394_v5  ;;  %v1697_v13 = vld [vmem:[%s1392_s12 + $0xa9] sm:$0xff] }
  0x46   : > { %v634_v30 = vadd.f32 %v618_v57, %v585_v62  ;;  %v534_v53 = vadd.f32 %v518_v34, %v485_v49  ;;  %v519_v33 = vmul.f32 %v1593_v1, %v1413_v17  ;;  %v571_v55 = vmul.f32 %v1637_v36, %v1415_v18 }
  0x47   : > { %v437_v54 = vadd.f32 %v421_v20, %v385_v50  ;;  %v337_v63 = vadd.f32 %v321_v46, %v288_v52  ;;  %v422_v6 = vmul.f32 %v1608_v23, %v1399_v9  ;;  %v273_v35 = vmul.f32 %v1579_v22, %v1380_v2 }
  0x48   : > { %1080 = vmatmul.msk.f32.gmra.mxu1 %vm714_vm1, %v698_v47  ;;  %v683_v29 = vadd.f32 %v667_v0, %v634_v30  ;;  %v586_v7 = vadd.f32 %v570_v43, %v534_v53  ;;  %v471_v39 = vmul.f32 %v1611_v24, %v1401_v10  ;;  %v322_v56 = vmul.f32 %v1582_v41, %v1382_v3 }
  0x49   : > { %v486_v57 = vadd.f32 %v470_v51, %v437_v54  ;;  %v386_v45 = vadd.f32 %v370_v14, %v337_v63  ;;  %v289_v15 = vadd.f32 %v1390_v4, %v273_v35  ;;  %v371_v22 = vmul.f32 %v1593_v1, %v1394_v5  ;;  %v1051_v1 = vld [vmem:[%s1392_s12 + $0x99] sm:$0xff] }
  0x4a   : > { %v620_v48 = vmul.f32 %v1050_v58, %v1423_v21  ;;  %v669_v16 = vmul.f32 %v1406_v11, %v1656_v60  ;;  %v520_v0 = vmul.f32 %v1624_v37, %v1413_v17  ;;  %v423_v41 = vmul.f32 %v1637_v36, %v1399_v9 }
  0x4b   : > { %v635_v25 = vadd.f32 %v619_v19, %v586_v7  ;;  %v535_v26 = vadd.f32 %v519_v33, %v486_v57  ;;  %v438_v27 = vadd.f32 %v422_v6, %v386_v45  ;;  %v338_v28 = vadd.f32 %v322_v56, %v289_v15  ;;  %v1037_v45 = vld [vmem:[%s1392_s12 + $0xb0] sm:$0xff] }
  0x4c   : > { %v699_v31 = vmax.f32 %v683_v29, 0.0  ;;  %v572_v32 = vmul.f32 %v1668_v12, %v1415_v18  ;;  %v472_v34 = vmul.f32 %v1050_v58, %v1401_v10  ;;  %v274_v42 = vmul.f32 %v1608_v23, %v1380_v2 }
  0x4d   : > { %1078 = vmatmul.msk.f32.gmra.mxu0 %vm714_vm1, %v696_v61  ;;  %v587_v8 = vadd.f32 %v571_v55, %v535_v26  ;;  %v487_v38 = vadd.f32 %v471_v39, %v438_v27  ;;  %v387_v43 = vadd.f32 %v371_v22, %v338_v28  ;;  %v1689_v61 = vld [vmem:[%s1392_s12 + $0xa8] sm:$0xff]  ;;  %v323_v19 = vmul.f32 %v1611_v24, %v1382_v3 }
  0x4e   : > { %v621_v44 = vmul.f32 %v1051_v1, %v1423_v21  ;;  %v521_v20 = vmul.f32 %v1656_v60, %v1413_v17  ;;  %v290_v46 = vadd.f32 %v1390_v4, %v274_v42  ;;  %v372_v23 = vmul.f32 %v1624_v37, %v1394_v5 }
  0x4f   : > { %v684_v47 = vadd.f32 %v668_v59, %v635_v25  ;;  %v636_v62 = vadd.f32 %v620_v48, %v587_v8  ;;  %v536_v49 = vadd.f32 %v520_v0, %v487_v38  ;;  %v439_v50 = vadd.f32 %v423_v41, %v387_v43  ;;  %v1068_v59 = vld [vmem:[%s1392_s12 + $0xaa] sm:$0xff]  ;;  %v1069_v41 = vld [vmem:[%s1392_s12 + $0xb2] sm:$0xff]  ;;  %v1038_v8 = vld [vmem:[%s1392_s12 + $0xc0] sm:$0xff] }
  0x50   : > { %1081 = vmatmul.msk.f32.gmra.mxu1 %vm714_vm1, %v699_v31  ;;  %v670_v24 = vmul.f32 %v1406_v11, %v1067_v40  ;;  %v573_v51 = vmul.f32 %v1689_v61, %v1415_v18  ;;  %v339_v52 = vadd.f32 %v323_v19, %v290_v46  ;;  %v424_v14 = vmul.f32 %v1668_v12, %v1399_v9  ;;  %v1053_v0 = vld [vmem:[%s1392_s12 + $0xb1] sm:$0xff] }
  0x51   : > { %v685_v30 = vadd.f32 %v669_v16, %v636_v62  ;;  %v588_v53 = vadd.f32 %v572_v32, %v536_v49  ;;  %v488_v33 = vadd.f32 %v472_v34, %v439_v50  ;;  %v622_v37 = vmul.f32 %v1697_v13, %v1423_v21 }
  0x52   : > { %v388_v55 = vadd.f32 %v372_v23, %v339_v52  ;;  %v473_v54 = vmul.f32 %v1051_v1, %v1401_v10  ;;  %v275_v63 = vmul.f32 %v1637_v36, %v1380_v2  ;;  %v324_v6 = vmul.f32 %v1050_v58, %v1382_v3  ;;  %v1054_v23 = vld [vmem:[%s1392_s12 + $0xc1] sm:$0xff] }
  0x53   : > { %v700_v35 = vmax.f32 %v684_v47, 0.0  ;;  %v701_v29 = vmax.f32 %v685_v30, 0.0  ;;  %v637_v7 = vadd.f32 %v621_v44, %v588_v53  ;;  %v537_v39 = vadd.f32 %v521_v20, %v488_v33 }
  0x54   : > { %v440_v56 = vadd.f32 %v424_v14, %v388_v55  ;;  %v522_v57 = vmul.f32 %v1067_v40, %v1413_v17  ;;  %v291_v15 = vadd.f32 %v1390_v4, %v275_v63  ;;  %v373_v22 = vmul.f32 %v1656_v60, %v1394_v5 }
  0x55   : > { %1083 = vmatmul.msk.f32.vlgmr.msra.gmra.mxu2 %vm714_vm1, %v701_v29  ;;  %v686_v36 = vadd.f32 %v670_v24, %v637_v7  ;;  %v589_v48 = vadd.f32 %v573_v51, %v537_v39  ;;  %v671_v58 = vmul.f32 %v1406_v11, %v1068_v59  ;;  %v425_v26 = vmul.f32 %v1689_v61, %v1399_v9  ;;  %v1039_v24 = vld [vmem:[%s1392_s12 + $0xc8] sm:$0xff] }
  0x56   : > { %v489_v16 = vadd.f32 %v473_v54, %v440_v56  ;;  %v340_v25 = vadd.f32 %v324_v6, %v291_v15  ;;  %v276_v27 = vmul.f32 %v1668_v12, %v1380_v2  ;;  %v574_v60 = vmul.f32 %v1037_v45, %v1415_v18  ;;  %v1055_v29 = vld [vmem:[%s1392_s12 + $0xc9] sm:$0xff] }
  0x57   : > { %v638_v28 = vadd.f32 %v622_v37, %v589_v48  ;;  %v474_v31 = vmul.f32 %v1697_v13, %v1401_v10  ;;  %v325_v32 = vmul.f32 %v1051_v1, %v1382_v3  ;;  %v374_v12 = vmul.f32 %v1067_v40, %v1394_v5  ;;  %v1070_v1 = vld [vmem:[%s1392_s12 + $0xc2] sm:$0xff] }
  0x58   : > { %1082 = vmatmul.msk.f32.gmra.mxu1 %vm714_vm1, %v700_v35  ;;  %v538_v34 = vadd.f32 %v522_v57, %v489_v16  ;;  %v389_v42 = vadd.f32 %v373_v22, %v340_v25  ;;  %v292_v38 = vadd.f32 %v1390_v4, %v276_v27  ;;  %v702_v43 = vmax.f32 %v686_v36, 0.0 }
  0x59   : > { %v623_v19 = vmul.f32 %v1053_v0, %v1423_v21  ;;  %v672_v44 = vmul.f32 %v1406_v11, %v1069_v41  ;;  %v523_v46 = vmul.f32 %v1068_v59, %v1413_v17  ;;  %v426_v62 = vmul.f32 %v1037_v45, %v1399_v9 }
  0x5a   : > { %v441_v20 = vadd.f32 %v425_v26, %v389_v42  ;;  %v341_v47 = vadd.f32 %v325_v32, %v292_v38  ;;  %v687_v49 = vadd.f32 %v671_v58, %v638_v28  ;;  %v575_v50 = vmul.f32 %v1038_v8, %v1415_v18  ;;  %v1056_v42 = vld [vmem:[%s1392_s12 + $0xd9] sm:$0xff] }
  0x5b   : > { %v277_v40 = vmul.f32 %v1689_v61, %v1380_v2  ;;  %v326_v51 = vmul.f32 %v1697_v13, %v1382_v3  ;;  %v590_v52 = vadd.f32 %v574_v60, %v538_v34  ;;  %v475_v53 = vmul.f32 %v1053_v0, %v1401_v10  ;;  %v1040_v60 = vld [vmem:[%s1392_s12 + $0xd8] sm:$0xff] }
  0x5c   : > { %v490_v14 = vadd.f32 %v474_v31, %v441_v20  ;;  %v390_v30 = vadd.f32 %v374_v12, %v341_v47  ;;  %v624_v33 = vmul.f32 %v1054_v23, %v1423_v21  ;;  %v673_v37 = vmul.f32 %v1406_v11, %v1070_v1 }
  0x5d   : > { %1084 = vmatmul.msk.f32.gmra.mxu2 %vm714_vm1, %v702_v43  ;;  %v293_v55 = vadd.f32 %v1390_v4, %v277_v40  ;;  %v375_v61 = vmul.f32 %v1068_v59, %v1394_v5  ;;  %v524_v13 = vmul.f32 %v1069_v41, %v1413_v17  ;;  %v576_v6 = vmul.f32 %v1039_v24, %v1415_v18  ;;  %v1071_v59 = vld [vmem:[%s1392_s12 + $0xca] sm:$0xff] }
  0x5e   : > { %v539_v54 = vadd.f32 %v523_v46, %v490_v14  ;;  %v442_v63 = vadd.f32 %v426_v62, %v390_v30  ;;  %v703_v35 = vmax.f32 %v687_v49, 0.0  ;;  %v427_v39 = vmul.f32 %v1038_v8, %v1399_v9  ;;  %v1072_v46 = vld [vmem:[%s1392_s12 + $0xda] sm:$0xff] }
  0x5f   : > { %v342_v7 = vadd.f32 %v326_v51, %v293_v55  ;;  %v278_v56 = vmul.f32 %v1037_v45, %v1380_v2  ;;  %v639_v57 = vadd.f32 %v623_v19, %v590_v52  ;;  %v327_v36 = vmul.f32 %v1053_v0, %v1382_v3  ;;  %v1041_v49 = vld [vmem:[%s1392_s12 + $0xe0] sm:$0xff] }
  0x60   : > { %v591_v15 = vadd.f32 %v575_v50, %v539_v54  ;;  %v491_v22 = vadd.f32 %v475_v53, %v442_v63  ;;  %v476_v58 = vmul.f32 %v1054_v23, %v1401_v10  ;;  %v376_v25 = vmul.f32 %v1069_v41, %v1394_v5  ;;  %v1057_v52 = vld [vmem:[%s1392_s12 + $0xe1] sm:$0xff] }
  0x61   : > { %v391_v48 = vadd.f32 %v375_v61, %v342_v7  ;;  %v294_v16 = vadd.f32 %v1390_v4, %v278_v56  ;;  %v625_v28 = vmul.f32 %v1055_v29, %v1423_v21  ;;  %v525_v45 = vmul.f32 %v1070_v1, %v1413_v17  ;;  %v1073_v53 = vld [vmem:[%s1392_s12 + $0xe2] sm:$0xff]  ;;  %s878_s12 = scalar_lea.hbm %s1840_s5, %s1093_s8 }
  0x62   : > { %v640_v26 = vadd.f32 %v624_v33, %v591_v15  ;;  %v540_v27 = vadd.f32 %v524_v13, %v491_v22  ;;  %v428_v3 = vmul.f32 %v1039_v24, %v1399_v9  ;;  %v688_v0 = vadd.f32 %v672_v44, %v639_v57  ;;  %s882_s15 = sshll.u32 %s878_s12, 4  ;;  %s883_s15 = int_to_ptr.hbm [resolvable:$true] %s882_s15 }
  0x63   : > { %v443_v2 = vadd.f32 %v427_v39, %v391_v48  ;;  %v343_v31 = vadd.f32 %v327_v36, %v294_v16  ;;  %v674_v4 = vmul.f32 %v1406_v11, %v1071_v59  ;;  %v577_v41 = vmul.f32 %v1040_v60, %v1415_v18  ;;  %s1188_s0 = sshra.s32 %s883_s15, 4  ;;  %s1189_s0 = int_to_ptr.hbm [resolvable:$true] %s1188_s0 }
  0x64   : > { %v689_v32 = vadd.f32 %v673_v37, %v640_v26  ;;  %v592_v34 = vadd.f32 %v576_v6, %v540_v27  ;;  %v477_v38 = vmul.f32 %v1055_v29, %v1401_v10  ;;  %v626_v20 = vmul.f32 %v1056_v42, %v1423_v21  ;;  %s1190_s22 = scalar_lea.hbm %s1189_s0, 8  ;;  %p1195_p2 = scmp.lt.s32.totalorder %s1189_s0, %s1840_s5 }
  0x65   : > { %1085 = vmatmul.msk.f32.gmra.mxu2 %vm714_vm1, %v703_v35  ;;  %v492_v5 = vadd.f32 %v476_v58, %v443_v2  ;;  %v392_v8 = vadd.f32 %v376_v25, %v343_v31  ;;  %v526_v23 = vmul.f32 %v1071_v59, %v1413_v17  ;;  %v704_v1 = vmax.f32 %v688_v0, 0.0  ;;  %p1191_p13 = scmp.ne.s32.totalorder %s1189_s0, %s1190_s22  ;;  %p1196_p4 = scmp.lt.s32.totalorder %s1194_s27, %s1190_s22 }
  0x66   : > { %v705_v12 = vmax.f32 %v689_v32, 0.0  ;;  %v641_v43 = vadd.f32 %v625_v28, %v592_v34  ;;  %v675_v10 = vmul.f32 %v1406_v11, %v1072_v46  ;;  %v578_v51 = vmul.f32 %v1041_v49, %v1415_v18  ;;  %v1173_v18 = vld [vmem:[%s1839_s4] ss:$0 sm:$0xff] }
  0x67   : > { %v541_v19 = vadd.f32 %v525_v45, %v492_v5  ;;  %v444_v9 = vadd.f32 %v428_v3, %v392_v8  ;;  %v627_v17 = vmul.f32 %v1057_v52, %v1423_v21  ;;  %v676_v55 = vmul.f32 %v1406_v11, %v1073_v53  ;;  %p1192_p0 = pnand %p1191_p13, %p1351_p3  ;;  %p1197_p5 = por %p1196_p4, %p1195_p2 }
  0x68   : > { %1087 = vmatmul.msk.f32.vlgmr.msra.gmra.mxu3 %vm714_vm1, %v705_v12  ;;  %v690_v44 = vadd.f32 %v674_v4, %v641_v43 }
  0x69   : > { %v593_v47 = vadd.f32 %v577_v41, %v541_v19  ;;  %v493_v62 = vadd.f32 %v477_v38, %v444_v9  ;;  %p1193_p1 = pneg %p1192_p0 }
  0x6a   : > { %v706_v50 = vmax.f32 %v690_v44, 0.0 }
  0x6b   : > { %v642_v24 = vadd.f32 %v626_v20, %v593_v47  ;;  %v542_v40 = vadd.f32 %v526_v23, %v493_v62  ;;  %p1198_p6 = pnand %p1197_p5, %p1193_p1 }
  0x6d   : > { %1086 = vmatmul.msk.f32.gmra.mxu2 %vm714_vm1, %v704_v1  ;;  %v691_v14 = vadd.f32 %v675_v10, %v642_v24  ;;  %v594_v30 = vadd.f32 %v578_v51, %v542_v40 }
  0x6f   : > { %v707_v33 = vmax.f32 %v691_v14, 0.0  ;;  %v643_v37 = vadd.f32 %v627_v17, %v594_v30 }
  0x70   : > { %1088 = vmatmul.msk.f32.gmra.mxu3 %vm714_vm1, %v706_v50 }
  0x71   : > { %v692_v61 = vadd.f32 %v676_v55, %v643_v37 }
  0x73   : > { %v708_v54 = vmax.f32 %v692_v61, 0.0 }
  0x78   : > { %1089 = vmatmul.msk.f32.gmra.mxu3 %vm714_vm1, %v707_v33 }
  0x80   : > { %1090 = vmatmul.msk.f32.gmra.mxu3 %vm714_vm1, %v708_v54 }
  0xb2   : > { %v784_v63 = vpop.f32.mrf.mxu0 }
  0xb3   : > { %v785_v13 = vadd.f32 %v1173_v18, %v784_v63 }
  0xb5   : > { %832 = vxpose.xlu0.b32.start [1/16] (narrow) %v785_v13, 8 }
  0xba   : > { %v787_v6 = vpop.f32.mrf.mxu0 }
  0xbb   : > { %v788_v21 = vadd.f32 %v1173_v18, %v787_v6 }
  0xbd   : > { %833 = vxpose.xlu0.b32.cont [2/16] (narrow) %v788_v21, 8  ;;  %v796_v11 = vpop.f32.mrf.mxu1 }
  0xbe   : > { %v797_v56 = vadd.f32 %v1173_v18, %v796_v11 }
  0xc2   : > { %v790_v35 = vpop.f32.mrf.mxu0 }
  0xc3   : > { %v791_v29 = vadd.f32 %v1173_v18, %v790_v35 }
  0xc5   : > { %834 = vxpose.xlu0.b32.cont [3/16] (narrow) %v791_v29, 8  ;;  %v799_v57 = vpop.f32.mrf.mxu1 }
  0xc6   : > { %v800_v15 = vadd.f32 %v1173_v18, %v799_v57 }
  0xca   : > { %v793_v7 = vpop.f32.mrf.mxu0 }
  0xcb   : > { %v794_v39 = vadd.f32 %v1173_v18, %v793_v7 }
  0xcd   : > { %835 = vxpose.xlu0.b32.cont [4/16] (narrow) %v794_v39, 8  ;;  %v802_v22 = vpop.f32.mrf.mxu1 }
  0xce   : > { %v803_v36 = vadd.f32 %v1173_v18, %v802_v22 }
  0xd5   : > { %836 = vxpose.xlu0.b32.cont [5/16] (narrow) %v797_v56, 8  ;;  %v805_v59 = vpop.f32.mrf.mxu1 }
  0xd6   : > { %v806_v58 = vadd.f32 %v1173_v18, %v805_v59 }
  0xd8   : > { %v808_v48 = vpop.f32.mrf.mxu2 }
  0xd9   : > { %v809_v16 = vadd.f32 %v1173_v18, %v808_v48 }
  0xdd   : > { %837 = vxpose.xlu0.b32.cont [6/16] (narrow) %v800_v15, 8 }
  0xe0   : > { %v811_v25 = vpop.f32.mrf.mxu2 }
  0xe1   : > { %v812_v26 = vadd.f32 %v1173_v18, %v811_v25 }
  0xe5   : > { %838 = vxpose.xlu0.b32.cont [7/16] (narrow) %v803_v36, 8 }
  0xe8   : > { %v814_v27 = vpop.f32.mrf.mxu2 }
  0xe9   : > { %v815_v28 = vadd.f32 %v1173_v18, %v814_v27 }
  0xeb   : > { %v820_v2 = vpop.f32.mrf.mxu3 }
  0xec   : > { %v821_v31 = vadd.f32 %v1173_v18, %v820_v2 }
  0xed   : > { %839 = vxpose.xlu0.b32.cont [8/16] (narrow) %v806_v58, 8 }
  0xf0   : > { %v817_v60 = vpop.f32.mrf.mxu2 }
  0xf1   : > { %v818_v45 = vadd.f32 %v1173_v18, %v817_v60 }
  0xf3   : > { %v823_v3 = vpop.f32.mrf.mxu3 }
  0xf4   : > { %v824_v0 = vadd.f32 %v1173_v18, %v823_v3 }
  0xf5   : > { %840 = vxpose.xlu0.b32.cont [9/16] (narrow) %v809_v16, 8 }
  0xfb   : > { %v826_v32 = vpop.f32.mrf.mxu3 }
  0xfc   : > { %v827_v34 = vadd.f32 %v1173_v18, %v826_v32 }
  0xfd   : > { %841 = vxpose.xlu0.b32.cont [10/16] (narrow) %v812_v26, 8 }
 0x103   : > { %v829_v4 = vpop.f32.mrf.mxu3 }
 0x104   : > { %v830_v5 = vadd.f32 %v1173_v18, %v829_v4 }
 0x105   : > { %842 = vxpose.xlu0.b32.cont [11/16] (narrow) %v815_v28, 8 }
 0x10d   : > { %843 = vxpose.xlu0.b32.cont [12/16] (narrow) %v818_v45, 8 }
 0x115   : > { %844 = vxpose.xlu0.b32.cont [13/16] (narrow) %v821_v31, 8 }
 0x11d   : > { %845 = vxpose.xlu0.b32.cont [14/16] (narrow) %v824_v0, 8 }
 0x125   : > { %846 = vxpose.xlu0.b32.cont [15/16] (narrow) %v827_v34, 8 }
 0x12d   : > { %847 = vxpose.xlu0.b32.end [16/16] (narrow) %v830_v5, 8 }
 0x159   : > { %v848_v41 = vpop.trf.xlu0 }
 0x15a   : > { %864 = vst [vmem:[%s231_s13] sm:$0xff] %v848_v41 }
 0x15b   : > { %1201 = shalt.err (!%p1198_p6)
}
 0x15c   : > { %1100 = dma.vmem_to_hbm [thread:$0]  (%p1351_p3), %s881_s14, 128, %s883_s15, %s866_s16  }
 0x15d PF: > { %p1106_p7 = scmp.ge.s32.totalorder %s1268_s25, 2  ;;  %s894_s26 = sand.u32 1, %s1240_s18  }
 0x15e   : > { %s895_s9 = scalar_lea.sflag [#allocation3], %s894_s26 }
 0x15f   : > { %p1103_p9 = pnand %p1106_p7, %p1360_p8 }
 0x161   : > { %p1104_p10 = pneg %p1103_p9 }
 0x163   : > { %1235 = dma.done.wait (%p1104_p10), %s895_s9, 128  }
 0x164   : > { %1237 = vsyncadd (%p1104_p10), %s895_s9, 4294967168  ;;  %s18_s25 = sadd.s32 1, %s1268_s25   ;;  %s1845_s18 = smov %s1244_s19 }
 0x165   : > { %p15_p11 = scmp.ge.s32.totalorder %s18_s25, 6   ;;  %s1846_s19 = smov %s1248_s20 }
 0x166   : > { %s1847_s20 = smov %s1369_s11  ;;  %s1848_s21 = smov %s1260_s23 }
 0x167   : > { %s1849_s22 = smov %s1264_s24  ;;  %s1850_s23 = smov %s1853_s28 }
 0x168   : > { %s1851_s24 = smov %s1857_s29  ;;  %17 = sbr.rel (!%p15_p11) target bundleno = 7 (0x7), region = 78 }
 0x16d   :  { %901 = vsyncpa [#allocation3], 1 }
 0x16e   :  { %903 = vsyncpa [#allocation3 + $0x1], 1 }

</bundles_post_ra>
